<compile_context>
chip_gen: v6e
topology: v6e:2x2x1
jax: 0.10.0
libtpu: 0.0.40
codegen_flags: <defaults>
</compile_context>

<pallas_src>
import functools

import jax
import jax.numpy as jnp
import numpy as np
from jax import lax
from jax.experimental import pallas as pl
from jax.experimental.pallas import tpu as pltpu


def _round_up(x, m):
    return (x + m - 1) // m * m


# Frame geometry for this architecture (7x7 -> 14x14 -> 28x28).
FP = 17       # frame for the 14x14 stage (conv1 padded/dilated input is exactly 17x17)
FQ = 31       # frame for the 28x28 stage (conv2 padded/dilated input is exactly 31x31)
IMG_P = 14    # image size held in frame P (at rows/cols 1..14)
IMG_Q = 28    # image size held in frame Q (at rows/cols 1..28)


# ----------------------------------------------------------------------------
# pltpu.roll lane-rotation convention, resolved ONCE at import time so library
# use cannot silently pick the wrong default (review correctness fix).
# ----------------------------------------------------------------------------
def _roll_probe_kernel(x_ref, o_ref):
    o_ref[...] = pltpu.roll(x_ref[...], 1, axis=1)


def _detect_roll_is_numpy_like():
    x = jnp.arange(8 * 128, dtype=jnp.float32).reshape(8, 128)
    y = pl.pallas_call(
        _roll_probe_kernel,
        out_shape=jax.ShapeDtypeStruct((8, 128), jnp.float32),
    )(x)
    return bool(jnp.array_equal(y, jnp.roll(x, 1, axis=1)))


_ROLL_LIKE_NUMPY = _detect_roll_is_numpy_like()


# ----------------------------------------------------------------------------
# fc1: out = z @ w + b, lane-dense (N = 6272 on lanes), bf16 MXU / f32 accumulate.
# ----------------------------------------------------------------------------
def _fc_kernel(z_ref, w_ref, b_ref, o_ref):
    o_ref[...] = (
        jnp.dot(z_ref[...], w_ref[...], preferred_element_type=jnp.float32)
        + b_ref[...]
    )


# ----------------------------------------------------------------------------
# Fused conv stack: all 7 transposed convs, activations VMEM-resident.
# ----------------------------------------------------------------------------
def _convstack_kernel(xp_ref, w1_ref, b1_ref, w11_ref, b11_ref, g_ref,
                      w2_ref, b2_ref, w21_ref, b21_ref, w3_ref, b3_ref,
                      w31_ref, b31_ref, w4_ref, b4_ref, mp_ref, mq_ref,
                      out_ref, xs_ref, *, numpy_roll):
    """Each conv reads its input at flat offset (a-1)*Wf + (b-1) relative to every
    output position (pltpu.roll lane rotations); valid outputs never wrap or cross
    sample frames (frames carry a zero ring re-established by the lane masks)."""

    def shift(v, off):
        # shift(v, off)[:, m] == v[:, (m + off) % M]
        if off == 0:
            return v
        mx = v.shape[1]
        amt = (-off) % mx if numpy_roll else off % mx
        return pltpu.roll(v, amt, axis=1)

    def conv(x_bf, w_ref, b_ref, wf, act, mask):
        # x_bf: (Cin, M) bf16.  w_ref: (kH, Cout_p, kW*Cin) bf16.  -> (Cout_p, M) f32.
        cin, mx = x_bf.shape
        kh, _, kwcin = w_ref.shape
        kw = kwcin // cin
        # Stack the kW column taps along the contraction dim (deep MXU pushes),
        # staged through VMEM scratch; taps rolled directly in bf16 (no f32 trip).
        for b in range(kw):
            xs_ref[b * cin:(b + 1) * cin, 0:mx] = shift(x_bf, b - 1)
        xs = xs_ref[0:kwcin, 0:mx]
        acc = None
        for a in range(kh):
            g = jnp.dot(w_ref[a], xs, preferred_element_type=jnp.float32)
            g = shift(g, (a - 1) * wf)               # row-tap offset
            acc = g if acc is None else acc + g
        acc = acc + b_ref[...]                        # (Cout_p, 1) lane-broadcast bias
        if act == "leaky":
            acc = jnp.where(acc > 0, acc, 0.2 * acc)
        else:
            acc = jnp.tanh(acc)
        if mask is not None:
            acc = acc * mask                          # re-zero frame ring / lane tail
        return acc

    mp = mp_ref[...]                                  # (1, MP)
    mq = mq_ref[...]                                  # (1, MQ)

    # ---- 14x14 stage, frame P ----
    a1 = conv(xp_ref[...], w1_ref, b1_ref, FP, "leaky", mp)                    # conv1
    a11 = conv(a1.astype(jnp.bfloat16), w11_ref, b11_ref, FP, "leaky", None)   # conv11
    # ---- frame change: x2 zero-dilation + pad 2 via one 0/1 scatter matmul ----
    xq = jnp.dot(a11.astype(jnp.bfloat16), g_ref[...],
                 preferred_element_type=jnp.float32)
    # ---- 28x28 stage, frame Q ----
    a2 = conv(xq.astype(jnp.bfloat16), w2_ref, b2_ref, FQ, "leaky", mq)        # conv2
    a21 = conv(a2.astype(jnp.bfloat16), w21_ref, b21_ref, FQ, "leaky", mq)     # conv21
    a3 = conv(a21.astype(jnp.bfloat16), w3_ref, b3_ref, FQ, "leaky", mq)       # conv3
    a31 = conv(a3.astype(jnp.bfloat16), w31_ref, b31_ref, FQ, "leaky", mq)     # conv31
    out_ref[...] = conv(a31.astype(jnp.bfloat16), w4_ref, b4_ref, FQ, "tanh", None)


# ----------------------------------------------------------------------------
# Parameters (deterministic synthetic init, PyTorch layouts) + one-time packing.
# ----------------------------------------------------------------------------
_LAYERS = (  # (name, stride, padding, activation) -- also drives the reference impl
    ("conv1", 2, 1, "leaky_relu"),
    ("conv11", 1, 1, "leaky_relu"),
    ("conv2", 2, 1, "leaky_relu"),
    ("conv21", 1, 1, "leaky_relu"),
    ("conv3", 1, 1, "leaky_relu"),
    ("conv31", 1, 1, "leaky_relu"),
    ("conv4", 1, 1, "tanh"),
)


def init_params(key, latent_dim=100):
    specs = {
        "fc1_w": (128 * 7 * 7, latent_dim), "fc1_b": (128 * 7 * 7,),
        "conv1_w": (128, 64, 4, 4), "conv1_b": (64,),
        "conv11_w": (64, 64, 3, 3), "conv11_b": (64,),
        "conv2_w": (64, 32, 4, 4), "conv2_b": (32,),
        "conv21_w": (32, 32, 3, 3), "conv21_b": (32,),
        "conv3_w": (32, 16, 3, 3), "conv3_b": (16,),
        "conv31_w": (16, 16, 3, 3), "conv31_b": (16,),
        "conv4_w": (16, 1, 3, 3), "conv4_b": (1,),
    }
    params = {}
    keys = jax.random.split(key, len(specs))
    for (name, shape), k in zip(specs.items(), keys):
        fan_in = int(np.prod(shape[1:])) if len(shape) > 1 else int(shape[0])
        scale = 1.0 / np.sqrt(max(fan_in, 1))
        params[name] = scale * jax.random.normal(k, shape, jnp.float32)
    return params


def pack_params(params, batch):
    """One-time weight/constant packing (hoisted out of the forward, per review)."""
    B = batch
    # Frame invariant: image + 1-pixel anchor + (k-1)-pixel read reach fits the frame,
    # so rolled reads from valid output positions never wrap / cross sample frames.
    assert FP >= 1 + IMG_P + 2 and FQ >= 1 + IMG_Q + 2
    MP = _round_up(B * FP * FP, 128)
    MQ = _round_up(B * FQ * FQ, 128)
    packed = {}

    # fc1: (6272, latent) torch layout -> (Kp, 6272) bf16 (ragged K padded to 128).
    w = params["fc1_w"]
    latent = w.shape[1]
    Kp = _round_up(latent, 128)
    packed["fc_w"] = jnp.pad(w.T, ((0, Kp - latent), (0, 0))).astype(jnp.bfloat16)
    packed["fc_b"] = params["fc1_b"].reshape(1, -1).astype(jnp.float32)

    # convs: (Cin, Cout, kH, kW) -> flip -> (kH, Cout_p, kW*Cin) bf16; biases (Cout_p,1).
    for name, _, _, _ in _LAYERS:
        w = params[name + "_w"]
        _, cout, kh, kw = w.shape
        wf = w[:, :, ::-1, ::-1]                                  # spatial flip
        wk = jnp.transpose(wf, (2, 1, 3, 0)).reshape(kh, cout, -1)  # [a, co, b*Cin+ci]
        cp = _round_up(cout, 8)
        packed[name + "_w"] = jnp.pad(
            wk, ((0, 0), (0, cp - cout), (0, 0))).astype(jnp.bfloat16)
        packed[name + "_b"] = jnp.pad(
            params[name + "_b"], (0, cp - cout)).reshape(cp, 1).astype(jnp.float32)

    # Lane masks: keep only the image interior of each frame (rows/cols 1..img).
    def frame_mask(hf, img, mx):
        m = np.zeros((B, hf, hf), np.float32)
        m[:, 1:1 + img, 1:1 + img] = 1.0
        out = np.zeros((1, mx), np.float32)
        out[0, :B * hf * hf] = m.reshape(-1)
        return jnp.asarray(out)

    packed["maskP"] = frame_mask(FP, IMG_P, MP)
    packed["maskQ"] = frame_mask(FQ, IMG_Q, MQ)

    # 0/1 scatter: 14x14 image in frame P (anchor (1,1)) -> x2 dilated + pad 2 in frame Q.
    G = np.zeros((MP, MQ), np.float32)
    for n in range(B):
        for i in range(IMG_P):
            for j in range(IMG_P):
                s = n * FP * FP + (1 + i) * FP + (1 + j)
                t = n * FQ * FQ + (2 + 2 * i) * FQ + (2 + 2 * j)
                G[s, t] = 1.0
    packed["G"] = jnp.asarray(G).astype(jnp.bfloat16)
    return packed


# ----------------------------------------------------------------------------
# Forward (jitted): fc1 Pallas matmul -> one lax.pad relayout -> fused conv stack.
# ----------------------------------------------------------------------------
def generator_forward_pallas(packed, z):
    B, latent = z.shape
    Kp, N = packed["fc_w"].shape
    Bp = _round_up(B, 8)
    MP = packed["maskP"].shape[1]
    MQ = packed["maskQ"].shape[1]
    assert MP == _round_up(B * FP * FP, 128) and MQ == _round_up(B * FQ * FQ, 128)

    # fc1
    zp = jnp.pad(z.astype(jnp.bfloat16), ((0, Bp - B), (0, Kp - latent)))
    fc = pl.pallas_call(
        _fc_kernel,
        out_shape=jax.ShapeDtypeStruct((Bp, N), jnp.float32),
    )(zp, packed["fc_w"], packed["fc_b"])[:B]

    # fc -> conv1 frame glue (tiny, one-shot XLA): view(B,128,7,7), channel-leading,
    # stride-2 zero-dilation + pad 2 via ONE lax.pad, flatten lane-dense to (128, MP).
    x = fc.reshape(B, 128, 7, 7).transpose(1, 0, 2, 3)
    x = lax.pad(x, jnp.array(0.0, x.dtype),
                ((0, 0, 0), (0, 0, 0), (2, 2, 1), (2, 2, 1)))       # (128, B, 17, 17)
    x = x.reshape(128, B * FP * FP)
    x = jnp.pad(x, ((0, 0), (0, MP - B * FP * FP))).astype(jnp.bfloat16)

    # Fused 7-layer conv stack: single pallas_call, whole arrays resident in VMEM.
    out = pl.pallas_call(
        functools.partial(_convstack_kernel, numpy_roll=_ROLL_LIKE_NUMPY),
        out_shape=jax.ShapeDtypeStruct((8, MQ), jnp.float32),
        scratch_shapes=[pltpu.VMEM((4 * 128, MQ), jnp.bfloat16)],   # stacked-tap staging
    )(x,
      packed["conv1_w"], packed["conv1_b"],
      packed["conv11_w"], packed["conv11_b"],
      packed["G"],
      packed["conv2_w"], packed["conv2_b"],
      packed["conv21_w"], packed["conv21_b"],
      packed["conv3_w"], packed["conv3_b"],
      packed["conv31_w"], packed["conv31_b"],
      packed["conv4_w"], packed["conv4_b"],
      packed["maskP"], packed["maskQ"])

    # Extract the 28x28 image (channel 0, frame Q rows/cols 1..28).
    img = out[0, :B * FQ * FQ].reshape(B, FQ, FQ)[:, 1:1 + IMG_Q, 1:1 + IMG_Q]
    return img.reshape(B, 1, IMG_Q, IMG_Q)


# ----------------------------------------------------------------------------
# Pure-JAX f32 reference (independent formulation via lax.conv_general_dilated).
# ----------------------------------------------------------------------------
def _tconv_ref(x, w, b, stride, padding):
    k = w.shape[2]
    pad = k - 1 - padding
    w_conv = jnp.transpose(w[:, :, ::-1, ::-1], (1, 0, 2, 3))      # OIHW
    y = lax.conv_general_dilated(
        x, w_conv, window_strides=(1, 1), padding=((pad, pad), (pad, pad)),
        lhs_dilation=(stride, stride), rhs_dilation=(1, 1),
        dimension_numbers=("NCHW", "OIHW", "NCHW"),
        precision=lax.Precision.HIGHEST)
    return y + b.reshape(1, -1, 1, 1)


def generator_forward_reference(params, z):
    B = z.shape[0]
    lrelu = lambda t: jnp.where(t > 0, t, 0.2 * t)
    x = jnp.dot(z, params["fc1_w"].T, precision=lax.Precision.HIGHEST) + params["fc1_b"]
    x = x.reshape(B, 128, 7, 7)
    for name, stride, padding, act in _LAYERS:
        x = _tconv_ref(x, params[name + "_w"], params[name + "_b"], stride, padding)
        x = jnp.tanh(x) if act == "tanh" else lrelu(x)
    return x


# ----------------------------------------------------------------------------
if __name__ == "__main__":
    key = jax.random.PRNGKey(0)
    k_params, k_z = jax.random.split(key)
    latent_dim = 100
    batch = 2
    params = init_params(k_params, latent_dim)
    packed = pack_params(params, batch)            # one-time packing (hoisted)
    z = jax.random.normal(k_z, (batch, latent_dim), jnp.float32)

    out = jax.block_until_ready(jax.jit(generator_forward_pallas)(packed, z))
    ref = jax.block_until_ready(jax.jit(generator_forward_reference)(params, z))

    assert out.shape == (batch, 1, 28, 28), out.shape
    assert bool(jnp.all(jnp.isfinite(out)))
    # bf16 MXU operands + bf16 inter-layer activations over 8 layers -> loose tolerance.
    np.testing.assert_allclose(np.asarray(out), np.asarray(ref), rtol=1e-1, atol=1e-1)
    print("KERNEL_OK")
</pallas_src>

<mosaic_0001>
module attributes {stable_mosaic.version = 11 : i64} {
  func.func @_roll_probe_kernel(%arg0: memref<8x128xf32, #tpu.memory_space<vmem>>, %arg1: memref<8x128xf32, #tpu.memory_space<vmem>>) attributes {dimension_semantics = [], scalar_prefetch = 0 : i64, scratch_operands = 0 : i64, tpu.core_type = #tpu.core_type<tc>} {
    %c0 = arith.constant 0 : index
    %c0_0 = arith.constant 0 : index
    %0 = vector.load %arg0[%c0, %c0_0] : memref<8x128xf32, #tpu.memory_space<vmem>>, vector<8x128xf32>
    %c1_i32 = arith.constant 1 : i32
    %1 = tpu.dynamic_rotate %0 by %c1_i32 dim 1 : vector<8x128xf32>, i32 -> vector<8x128xf32>
    %c0_1 = arith.constant 0 : index
    %c0_2 = arith.constant 0 : index
    %2 = vector.load %arg1[%c0_1, %c0_2] : memref<8x128xf32, #tpu.memory_space<vmem>>, vector<8x128xf32>
    tpu.vector_store %arg1[%c0_1, %c0_2], %1 {strides = array<i32>} : memref<8x128xf32, #tpu.memory_space<vmem>>, vector<8x128xf32>,
    return
  }
}

</mosaic_0001>

<bundles_post_ra>
// kernel: tpu_custom_call.1
= control target key start
LH: loop header
LB: loop body
LE: loop exit
PB: predicated region body
PF: predicated region fallthrough
CT: control target
= control target key end

     0   :  { %6 = vsyncpa [#allocation3], 0  ;;  %s106_s0 = inlined_call_operand.hbm [shape: f32[8,128], index: 0, kind: input, shape index: {}]   ;;  %s107_s1 = inlined_call_operand.hbm [shape: f32[8,128], index: 1, kind: output, shape index: {}]  }
   0x1   :  { %7 = vsyncpa [#allocation4], 0  ;;  %s87_s6 = smov [#allocation2]  }
   0x2   :  { %s14_s7 = sshll.u32 %s87_s6, 4  ;;  %s15_s7 = int_to_ptr.vmem [resolvable:$true] %s14_s7 }
   0x3   :  { %s51_s8 = scalar_lea.vmem %s15_s7, 128  ;;  %p56_p1 = scmp.lt.s32.totalorder %s15_s7, %s15_s7 }
   0x4   :  { %p52_p0 = scmp.ne.s32.totalorder %s15_s7, %s51_s8  ;;  %p57_p2 = scmp.lt.s32.totalorder %s51_s8, %s51_s8 }
   0x6   :  { %p58_p3 = por %p57_p2, %p56_p1 }
   0x8   :  { %p59_p4 = pnand %p58_p3, %p52_p0 }
   0xa   :  { %62 = shalt.err (!%p59_p4)
}
   0xb   :  { %17 = dma.hbm_to_vmem [thread:$0]  %s106_s0, 128, %s15_s7, [#allocation3]  }
   0xc   :  { %83 = dma.done.wait [#allocation3], 128  }
   0xd   :  { %84 = vsyncadd [#allocation3], 4294967168  ;;  %v21_v0 = vld [vmem:[#allocation2] sm:$0xff]  ;;  %s88_s11 = smov 1   ;;  %s89_s12 = smov [#allocation5]  }
   0xe   :  { %22 = vrot.lane.b32.xlu0 %v21_v0, %s88_s11  ;;  %s31_s13 = sshll.u32 %s89_s12, 4  ;;  %s32_s13 = int_to_ptr.vmem [resolvable:$true] %s31_s13 }
   0xf   :  { %s63_s14 = scalar_lea.vmem %s32_s13, 128  ;;  %p68_p6 = scmp.lt.s32.totalorder %s32_s13, %s32_s13 }
  0x10   :  { %p64_p5 = scmp.ne.s32.totalorder %s32_s13, %s63_s14  ;;  %p69_p7 = scmp.lt.s32.totalorder %s63_s14, %s63_s14 }
  0x12   :  { %p70_p8 = por %p69_p7, %p68_p6 }
  0x14   :  { %p71_p9 = pnand %p70_p8, %p64_p5 }
  0x80   :  { %v23_v1 = vpop.permute.xlu0 %22 }
  0x81   :  { %24 = vst [vmem:[#allocation5] sm:$0xff] %v23_v1 }
  0x82   :  { %74 = shalt.err (!%p71_p9)
}
  0x83   :  { %34 = dma.vmem_to_hbm [thread:$0]  %s32_s13, 128, %s107_s1, [#allocation4]  }
  0x84   :  { %85 = dma.done.wait [#allocation4], 128  }
  0x85   :  { %86 = vsyncadd [#allocation4], 4294967168 }
  0x86   :  { %38 = vsyncpa [#allocation3], 1 }
  0x87   :  { %39 = vsyncpa [#allocation4], 1 }

</bundles_post_ra>
